<compile_context>
chip_gen: v5e
topology: v5e:2x2
jax: 0.10.0
libtpu: 0.0.40
codegen_flags: <defaults>
</compile_context>

<pallas_src>
import functools

import numpy as np
import jax
import jax.numpy as jnp
from jax.experimental import pallas as pl
from jax.experimental.pallas import tpu as pltpu


# ---------------------------------------------------------------------------
# Static (shape-only) setup: faithful port of get_same_idxs + mean folding.
# ---------------------------------------------------------------------------
def _get_same_idxs(sample_time_len, embedding_len):
    """Direct port of the reference get_same_idxs (list of (row, col) lists)."""
    same_idxs = []
    if embedding_len > sample_time_len:
        for start_col_idx in range(1, embedding_len):
            row_num = min(start_col_idx + 1, sample_time_len)
            same_idxs.append([(row_idx, start_col_idx - row_idx)
                              for row_idx in range(row_num)])
        for start_col_idx in range(embedding_len - sample_time_len + 1,
                                   embedding_len - 1):
            idx_count = embedding_len - start_col_idx
            same_idxs.append([(sample_time_len - 1 - i, start_col_idx + i)
                              for i in range(idx_count)])
    else:
        for start_row_idx in range(1, sample_time_len):
            col_num = min(start_row_idx + 1, embedding_len)
            same_idxs.append([(start_row_idx - col_idx, col_idx)
                              for col_idx in range(col_num)])
        for start_row_idx in range(sample_time_len - embedding_len + 1,
                                   sample_time_len - 1):
            idx_count = sample_time_len - start_row_idx
            same_idxs.append([(start_row_idx + i, embedding_len - 1 - i)
                              for i in range(idx_count)])
    return same_idxs


@functools.lru_cache(maxsize=None)
def _build_weight_matrix(train_len, embedding_len):
    """(T*E, n_out) averaging matrix folding gather + mean (all_y=False)."""
    same_idxs = _get_same_idxs(train_len, embedding_len)[train_len - 1:]
    n_out = len(same_idxs) + 1
    m = np.zeros((train_len * embedding_len, n_out), dtype=np.float32)
    for i, idxs in enumerate(same_idxs):
        w = 1.0 / float(len(idxs))
        for (r, c) in idxs:
            m[r * embedding_len + c, i] = w
    # final entry: delay_embedding[:, -1, -1]
    m[(train_len - 1) * embedding_len + (embedding_len - 1), n_out - 1] = 1.0
    return m


# ---------------------------------------------------------------------------
# Pallas kernel: one MXU matmul per batch tile, f32 accumulation.
# ---------------------------------------------------------------------------
def _embedding2y_kernel(x_ref, m_ref, o_ref):
    # x_ref: (bt, T*E)   lane-dense contraction operand
    # m_ref: (T*E, n_out) static averaging weights (same block every step ->
    #                      DMA'd once, resident in VMEM across the grid)
    o_ref[...] = jnp.dot(
        x_ref[...], m_ref[...], preferred_element_type=jnp.float32
    ).astype(o_ref.dtype)


def _choose_batch_tile(B, K):
    """8-aligned batch tile, capped by batch size, 1024 rows, and VMEM budget."""
    if B <= 8:
        return B  # full-extent block (exempt from the (8,128) divisibility rule)
    # Keep the double-buffered x tile under ~8 MiB of VMEM.
    vmem_cap_rows = max(8, (8 << 20) // (K * 4 * 2))
    bt = 8
    while bt * 2 <= min(B, 1024, vmem_cap_rows):
        bt *= 2
    return bt


@jax.jit
def embedding2y_forward(x):
    """x: (B, TRAIN_LEN, EMBEDDING_LEN) f32  ->  (B, n_out) f32."""
    B, T, E = x.shape
    m_np = _build_weight_matrix(T, E)              # static, shape-only
    K, n_out = m_np.shape
    m = jnp.asarray(m_np)

    # Free row-major reshape: put the whole T*E contraction on the lane axis.
    x_flat = x.reshape(B, K).astype(jnp.float32)

    bt = _choose_batch_tile(B, K)
    grid = (pl.cdiv(B, bt),)                       # ragged last block is masked

    return pl.pallas_call(
        _embedding2y_kernel,
        out_shape=jax.ShapeDtypeStruct((B, n_out), jnp.float32),
        grid_spec=pltpu.PrefetchScalarGridSpec(
            num_scalar_prefetch=0,
            grid=grid,
            in_specs=[
                pl.BlockSpec((bt, K), lambda b: (b, 0)),
                pl.BlockSpec((K, n_out), lambda b: (0, 0)),
            ],
            out_specs=pl.BlockSpec((bt, n_out), lambda b: (b, 0)),
        ),
        compiler_params=pltpu.CompilerParams(
            dimension_semantics=("parallel",)),
    )(x_flat, m)


# ---------------------------------------------------------------------------
# Pure-numpy reference (port of embedding_2_predict_y, all_y=False).
# ---------------------------------------------------------------------------
def _reference_forward(x_np, train_len, embedding_len):
    same_idxs = _get_same_idxs(train_len, embedding_len)[train_len - 1:]
    B = x_np.shape[0]
    out = np.zeros((B, len(same_idxs) + 1), dtype=np.float32)
    for b in range(B):
        for i, idxs in enumerate(same_idxs):
            vals = np.asarray([x_np[b, r, c] for (r, c) in idxs],
                              dtype=np.float32)
            out[b, i] = vals.mean()
        out[b, -1] = x_np[b, -1, -1]
    return out


if __name__ == "__main__":
    key = jax.random.PRNGKey(0)

    # shapes implied by the module: (BATCH_SIZE, TRAIN_LEN, EMBEDDING_LEN)
    B, TRAIN_LEN, EMBEDDING_LEN = 2, 16, 8
    x = jax.random.normal(key, (B, TRAIN_LEN, EMBEDDING_LEN), jnp.float32)

    y = embedding2y_forward(x)
    jax.block_until_ready(y)

    ref = _reference_forward(np.asarray(x), TRAIN_LEN, EMBEDDING_LEN)
    assert y.shape == ref.shape, (y.shape, ref.shape)
    assert np.allclose(np.asarray(y), ref, rtol=1e-5, atol=1e-5)
    assert bool(jnp.all(jnp.isfinite(y)))
    print("KERNEL_OK")
</pallas_src>

<mosaic_0001>
module attributes {stable_mosaic.version = 11 : i64} {
  func.func @_embedding2y_kernel(%arg0: i32, %arg1: memref<2x128xf32, #tpu.memory_space<vmem>>, %arg2: memref<128x7xf32, #tpu.memory_space<vmem>>, %arg3: memref<2x7xf32, #tpu.memory_space<vmem>>) attributes {dimension_semantics = [#tpu.dimension_semantics<parallel>], iteration_bounds = array<i64: 1>, scalar_prefetch = 0 : i64, scratch_operands = 0 : i64, tpu.core_type = #tpu.core_type<tc>, window_params = [{transform_indices = @transform_0, window_bounds = array<i64: 2, 128>}, {pipeline_mode = #tpu.pipeline_mode<synchronous>, transform_indices = @transform_1, window_bounds = array<i64: 128, 7>}, {transform_indices = @transform_2, window_bounds = array<i64: 2, 7>}]} {
    %c0 = arith.constant 0 : index
    %c0_0 = arith.constant 0 : index
    %0 = vector.load %arg1[%c0, %c0_0] : memref<2x128xf32, #tpu.memory_space<vmem>>, vector<2x128xf32>
    %c0_1 = arith.constant 0 : index
    %c0_2 = arith.constant 0 : index
    %1 = vector.load %arg2[%c0_1, %c0_2] : memref<128x7xf32, #tpu.memory_space<vmem>>, vector<128x7xf32>
    %cst = arith.constant dense<0.000000e+00> : vector<2x7xf32>
    %2 = tpu.matmul %0, %1, %cst {dimension_numbers = #tpu.dot_dimension_numbers<[1], [0], [0], [1], [0, 0, 1, 1], [], []>} : vector<2x128xf32>, vector<128x7xf32>, vector<2x7xf32> -> vector<2x7xf32>
    %c0_3 = arith.constant 0 : index
    %c0_4 = arith.constant 0 : index
    %3 = vector.load %arg3[%c0_3, %c0_4] : memref<2x7xf32, #tpu.memory_space<vmem>>, vector<2x7xf32>
    tpu.vector_store %arg3[%c0_3, %c0_4], %2 {strides = array<i32>} : memref<2x7xf32, #tpu.memory_space<vmem>>, vector<2x7xf32>,
    return
  }
  func.func @transform_0(%arg0: i32) -> (i32, i32) {
    %c0_i32 = arith.constant 0 : i32
    %c0_i32_0 = arith.constant 0 : i32
    return %arg0, %c0_i32 : i32, i32
  }
  func.func @transform_1(%arg0: i32) -> (i32, i32) {
    %c0_i32 = arith.constant 0 : i32
    %c0_i32_0 = arith.constant 0 : i32
    %c0_i32_1 = arith.constant 0 : i32
    return %c0_i32, %c0_i32_0 : i32, i32
  }
  func.func @transform_2(%arg0: i32) -> (i32, i32) {
    %c0_i32 = arith.constant 0 : i32
    %c0_i32_0 = arith.constant 0 : i32
    return %arg0, %c0_i32 : i32, i32
  }
}

</mosaic_0001>

<bundles_post_ra>
// kernel: embedding2y_forward.1
= control target key start
LH: loop header
LB: loop body
LE: loop exit
PB: predicated region body
PF: predicated region fallthrough
CT: control target
= control target key end

     0   :  { %7 = vsyncpa [#allocation3], 0  ;;  %s168_s0 = inlined_call_operand.vmem [shape: f32[2,128], index: 0, kind: input, shape index: {}]   ;;  %s169_s1 = inlined_call_operand.hbm [shape: f32[128,7], index: 1, kind: input, shape index: {}]   ;;  %s170_s2 = inlined_call_operand.hbm [shape: f32[2,7], index: 2, kind: output, shape index: {}]  }
   0x1   :  { %8 = vsyncpa [#allocation4], 0  ;;  %s15_s11 = sshll.u32 %s169_s1, 4  ;;  %s140_s12 = smov [#allocation2]   ;;  %s16_s11 = int_to_ptr.hbm [resolvable:$true] %s15_s11 }
   0x2   :  { %s17_s13 = sshll.u32 %s140_s12, 4  ;;  %s141_s14 = smov 128   ;;  %s18_s13 = int_to_ptr.vmem [resolvable:$true] %s17_s13 }
   0x3   :  { %s142_s15 = smov 8  }
   0x4   :  { %23 = dma.hbm_to_vmem [thread:$0]  %s16_s11, 2048, %s18_s13, [#allocation3], %s141_s14, %s141_s14, %s142_s15  }
   0x5   :  { %136 = dma.done.wait [#allocation3], 2048  }
   0x6   :  { %137 = vsyncadd [#allocation3], 4294965248  ;;  %v44_v0 = vld [vmem:[#allocation2 + $0x78] sm:$0xff]  ;;  %v43_v1 = vld [vmem:[#allocation2 + $0x70] sm:$0xff]  ;;  %s143_s17 = smov [#allocation5]   ;;  %s74_s21 = sshll.u32 %s170_s2, 4  ;;  %s75_s21 = int_to_ptr.hbm [resolvable:$true] %s74_s21 }
   0x7   :  { %45 = vmatpush.msra.mxu0 %v44_v0  ;;  %v42_v2 = vld [vmem:[#allocation2 + $0x68] sm:$0xff]  ;;  %v41_v3 = vld [vmem:[#allocation2 + $0x60] sm:$0xff]  ;;  %v40_v4 = vld [vmem:[#allocation2 + $0x58] sm:$0xff]  ;;  %s72_s18 = sshll.u32 %s143_s17, 4  ;;  %vm65_vm0 = vcmask 50176   ;;  %s73_s18 = int_to_ptr.vmem [resolvable:$true] %s72_s18 }
   0x8   :  { %v39_v5 = vld [vmem:[#allocation2 + $0x50] sm:$0xff]  ;;  %v38_v6 = vld [vmem:[#allocation2 + $0x48] sm:$0xff]  ;;  %v37_v7 = vld [vmem:[#allocation2 + $0x40] sm:$0xff] }
   0x9   :  { %46 = vmatpush.msra.mxu0 %v43_v1  ;;  %v36_v8 = vld [vmem:[#allocation2 + $0x38] sm:$0xff]  ;;  %v35_v9 = vld [vmem:[#allocation2 + $0x30] sm:$0xff]  ;;  %v34_v10 = vld [vmem:[#allocation2 + $0x28] sm:$0xff] }
   0xa   :  { %v33_v11 = vld [vmem:[#allocation2 + $0x20] sm:$0xff]  ;;  %v32_v12 = vld [vmem:[#allocation2 + $0x18] sm:$0xff]  ;;  %v31_v13 = vld [vmem:[#allocation2 + $0x10] sm:$0xff] }
   0xb   :  { %47 = vmatpush.msra.mxu0 %v42_v2  ;;  %v30_v14 = vld [vmem:[#allocation2 + $0x8] sm:$0xff]  ;;  %v29_v15 = vld [vmem:[#allocation2] sm:$0xff] }
   0xc   :  { %v28_v16 = vld [vmem:[%s168_s0] sm:$0x3] }
   0xd   :  { %48 = vmatpush.msra.mxu0 %v41_v3 }
   0xf   :  { %49 = vmatpush.msra.mxu0 %v40_v4 }
  0x11   :  { %50 = vmatpush.msra.mxu0 %v39_v5 }
  0x13   :  { %51 = vmatpush.msra.mxu0 %v38_v6 }
  0x15   :  { %52 = vmatpush.msra.mxu0 %v37_v7 }
  0x17   :  { %53 = vmatpush.msra.mxu0 %v36_v8 }
  0x19   :  { %54 = vmatpush.msra.mxu0 %v35_v9 }
  0x1b   :  { %55 = vmatpush.msra.mxu0 %v34_v10 }
  0x1d   :  { %56 = vmatpush.msra.mxu0 %v33_v11 }
  0x1f   :  { %57 = vmatpush.msra.mxu0 %v32_v12 }
  0x21   :  { %58 = vmatpush.msra.mxu0 %v31_v13 }
  0x23   :  { %59 = vmatpush.msra.mxu0 %v30_v14 }
  0x25   :  { %60 = vmatpush.msra.mxu0 %v29_v15 }
  0x26   :  { %61 = vmatmul.f32.vlgmr.msra.gmra.mxu0 %v28_v16 }
  0xa3   :  { %v62_v17 = vpop.f32.mrf.mxu0 }
  0xa4   :  { %66 = vst.msk [vmem:[#allocation5] sm:$0x3] %vm65_vm0, %v62_v17 }
  0xa5   :  { %77 = dma.vmem_to_hbm [thread:$0]  %s73_s18, 32, %s75_s21, [#allocation4]  }
  0xa6   :  { %138 = dma.done.wait [#allocation4], 32  }
  0xa7   :  { %139 = vsyncadd [#allocation4], 4294967264 }
  0xa8   :  { %82 = vsyncpa [#allocation3], 1 }
  0xa9   :  { %83 = vsyncpa [#allocation4], 1 }

</bundles_post_ra>
